<compile_context>
chip_gen: v7x
topology: tpu7x:2x2x1
jax: 0.10.0
libtpu: 0.0.40
codegen_flags: <defaults>
</compile_context>

<pallas_src>
import jax
import jax.numpy as jnp
from jax.experimental import pallas as pl
from jax.experimental.pallas import tpu as pltpu


_LANE = 128      # lane width: pad every feature dim to a multiple of this
                 # (256-alignment can help v6e/v7x MXU occupancy; 128 is native on v5e)
_SUBLANE = 16    # batch-tile granularity (bf16-safe sublane multiple)


def _round_up(n, m):
    return ((n + m - 1) // m) * m


def _vmem_cap_bytes():
    """~78% of the device's real VMEM capacity; conservative fallback if unqueryable."""
    try:
        return int(0.78 * pltpu.get_tpu_info().vmem_capacity_bytes)
    except Exception:
        return 48 << 20        # safe even on v7x's 64 MiB per-TC VMEM


# ----------------------------------------------------------------------------- kernels
def _ae_kernel_folded(x_ref, w1_ref, b1_ref, w23_ref, b23_ref, w4_ref, b4_ref, o_ref):
    """x already in MXU dtype. 3 matmuls: entry->enc_mid (ReLU) -> dec_mid (ReLU) -> entry."""
    cd = w1_ref.dtype
    h = jnp.dot(x_ref[...], w1_ref[...], preferred_element_type=jnp.float32) + b1_ref[...]
    h = jnp.maximum(h, 0.0)                                  # f32 VPU epilogue
    m = jnp.dot(h.astype(cd), w23_ref[...], preferred_element_type=jnp.float32) + b23_ref[...]
    m = jnp.maximum(m, 0.0)
    out = jnp.dot(m.astype(cd), w4_ref[...], preferred_element_type=jnp.float32) + b4_ref[...]
    o_ref[...] = out.astype(o_ref.dtype)


def _ae_kernel_unfolded(x_ref, w1_ref, b1_ref, w2_ref, b2_ref,
                        w3_ref, b3_ref, w4_ref, b4_ref, o_ref):
    """Literal 4-matmul layout of the PyTorch module (keeps latent z materialized)."""
    cd = w1_ref.dtype
    h = jnp.dot(x_ref[...], w1_ref[...], preferred_element_type=jnp.float32) + b1_ref[...]
    h = jnp.maximum(h, 0.0)
    z = jnp.dot(h.astype(cd), w2_ref[...], preferred_element_type=jnp.float32) + b2_ref[...]
    h2 = jnp.dot(z.astype(cd), w3_ref[...], preferred_element_type=jnp.float32) + b3_ref[...]
    h2 = jnp.maximum(h2, 0.0)
    out = jnp.dot(h2.astype(cd), w4_ref[...], preferred_element_type=jnp.float32) + b4_ref[...]
    o_ref[...] = out.astype(o_ref.dtype)


# ------------------------------------------------------------------ params / preparation
def _linear_params(key, fan_in, fan_out, dtype=jnp.float32):
    """nn.Linear default init: U(-1/sqrt(fan_in), 1/sqrt(fan_in)); W stored (in, out)."""
    kw, kb = jax.random.split(key)
    bound = 1.0 / (fan_in ** 0.5)
    w = jax.random.uniform(kw, (fan_in, fan_out), dtype, minval=-bound, maxval=bound)
    b = jax.random.uniform(kb, (1, fan_out), dtype, minval=-bound, maxval=bound)
    return w, b


def make_autoencoder_params(key, entry_size, latent_dims, dtype=jnp.float32):
    # Matches module __init__ arithmetic exactly.
    enc_mid = latent_dims + (entry_size - latent_dims) // 2
    dec_mid = latent_dims + (entry_size - latent_dims) // 2
    k1, k2, k3, k4 = jax.random.split(key, 4)
    return (
        _linear_params(k1, entry_size, enc_mid, dtype),   # encoder.linear1
        _linear_params(k2, enc_mid, latent_dims, dtype),  # encoder.linear2
        _linear_params(k3, latent_dims, dec_mid, dtype),  # decoder.linear1
        _linear_params(k4, dec_mid, entry_size, dtype),   # decoder.linear2
    )


def _pad2d(a, rows, cols):
    return jnp.pad(a, ((0, rows - a.shape[0]), (0, cols - a.shape[1])))


def prepare_params(params, compute_dtype=jnp.bfloat16, fold_middle=True):
    """Zero-pad feature dims to multiples of 128 (lane-dense MXU, unmasked stores), cast
    weights to the MXU dtype once (biases stay f32), and optionally fold the two middle
    linears (no nonlinearity between them) into one weight/bias pair."""
    (w1, b1), (w2, b2), (w3, b3), (w4, b4) = params
    entry, enc_mid = w1.shape
    latent = w2.shape[1]
    dec_mid = w3.shape[1]

    entry_p = _round_up(entry, _LANE)
    enc_mid_p = _round_up(enc_mid, _LANE)
    latent_p = _round_up(latent, _LANE)
    dec_mid_p = _round_up(dec_mid, _LANE)
    cd = compute_dtype

    prepared = {
        "entry": int(entry), "entry_pad": int(entry_p),
        "w1": _pad2d(w1, entry_p, enc_mid_p).astype(cd),
        "b1": _pad2d(b1.reshape(1, -1), 1, enc_mid_p).astype(jnp.float32),
        "w4": _pad2d(w4, dec_mid_p, entry_p).astype(cd),
        "b4": _pad2d(b4.reshape(1, -1), 1, entry_p).astype(jnp.float32),
    }
    if fold_middle:
        # Only valid because the forward returns just the reconstruction (z not exposed).
        w23 = jnp.dot(w2.astype(jnp.float32), w3.astype(jnp.float32))
        b23 = jnp.dot(b2.reshape(1, -1).astype(jnp.float32), w3.astype(jnp.float32)) \
              + b3.reshape(1, -1).astype(jnp.float32)
        prepared["w23"] = _pad2d(w23, enc_mid_p, dec_mid_p).astype(cd)
        prepared["b23"] = _pad2d(b23, 1, dec_mid_p).astype(jnp.float32)
    else:
        prepared["w2"] = _pad2d(w2, enc_mid_p, latent_p).astype(cd)
        prepared["b2"] = _pad2d(b2.reshape(1, -1), 1, latent_p).astype(jnp.float32)
        prepared["w3"] = _pad2d(w3, latent_p, dec_mid_p).astype(cd)
        prepared["b3"] = _pad2d(b3.reshape(1, -1), 1, dec_mid_p).astype(jnp.float32)
    return prepared


# ------------------------------------------------------------------------------ wrapper
def autoencoder_forward(x, prepared, *, tb_max=512, out_dtype=jnp.float32):
    """x: (B, C, T) or (B, entry). Returns (B, entry) in out_dtype."""
    B = x.shape[0]
    entry = prepared["entry"]
    entry_p = prepared["entry_pad"]
    cd = prepared["w1"].dtype

    # torch.flatten(x, 1), cast to the MXU dtype, and feature-pad in ONE wrapper op
    # (halves the input DMA bytes for bf16; no batch padding at all).
    x2d = jnp.pad(x.reshape(B, -1).astype(cd), ((0, 0), (0, entry_p - entry)))

    folded = "w23" in prepared
    if folded:
        weights = (prepared["w1"], prepared["b1"], prepared["w23"], prepared["b23"],
                   prepared["w4"], prepared["b4"])
        kernel = _ae_kernel_folded
    else:
        weights = (prepared["w1"], prepared["b1"], prepared["w2"], prepared["b2"],
                   prepared["w3"], prepared["b3"], prepared["w4"], prepared["b4"])
        kernel = _ae_kernel_unfolded

    # Batch tiling: multiple of 16 sublanes, capped at tb_max; ragged last tile is
    # handled by Pallas (cdiv grid). Prefer >=2 grid steps so v7x megacore can shard
    # the "parallel" batch axis over both TensorCores (negligible cost elsewhere).
    tb = min(tb_max, _round_up(max(B, 1), _SUBLANE))
    if pl.cdiv(B, tb) == 1 and B > _SUBLANE:
        tb = _round_up(pl.cdiv(B, 2), _SUBLANE)
    grid = (pl.cdiv(B, tb),)

    io_in_spec = pl.BlockSpec((tb, entry_p), lambda i: (i, 0))    # pipelined input tiles
    io_out_spec = pl.BlockSpec((tb, entry_p), lambda i: (i, 0))   # lane-dense output tiles

    # Scoped-VMEM budget from the actual footprint, clamped to the device ceiling.
    weight_bytes = sum(int(a.size) * a.dtype.itemsize for a in weights)
    feat_max = max(int(a.shape[-1]) for a in weights)
    io_bytes = 2 * tb * entry_p * (jnp.dtype(cd).itemsize + jnp.dtype(out_dtype).itemsize)
    act_bytes = 2 * tb * feat_max * 4
    cap = _vmem_cap_bytes()
    vmem_limit = int(min(max(2 * weight_bytes + io_bytes + act_bytes + (8 << 20),
                             16 << 20), cap))

    def build(single_buffer_weights):
        if single_buffer_weights:
            # Constant index_map + single buffer: weights stay resident at 1x VMEM cost.
            def wspec(a):
                return pl.BlockSpec(a.shape, lambda i: (0, 0),
                                    pipeline_mode=pl.Buffered(1))
        else:
            def wspec(a):
                return pl.BlockSpec(a.shape, lambda i: (0, 0))
        return pl.pallas_call(
            kernel,
            out_shape=jax.ShapeDtypeStruct((B, entry_p), out_dtype),
            grid=grid,
            in_specs=[io_in_spec] + [wspec(a) for a in weights],
            out_specs=io_out_spec,
            compiler_params=pltpu.CompilerParams(
                dimension_semantics=("parallel",),     # v7x: shard batch grid over 2 TCs
                vmem_limit_bytes=vmem_limit),
        )

    try:
        out = build(True)(x2d, *weights)
    except Exception:
        # Fallback: default double-buffered weight specs (if Buffered(1) is unsupported).
        out = build(False)(x2d, *weights)

    return out[:, :entry] if entry_p != entry else out


# ---------------------------------------------------------------------------- reference
def _reference_forward(x, params, matmul_dtype=jnp.float32):
    B = x.shape[0]
    h = x.reshape(B, -1).astype(jnp.float32)
    (w1, b1), (w2, b2), (w3, b3), (w4, b4) = params

    def lin(a, w, b):
        return jnp.dot(a.astype(matmul_dtype), w.astype(matmul_dtype),
                       preferred_element_type=jnp.float32) + b

    h = jnp.maximum(lin(h, w1, b1), 0.0)
    z = lin(h, w2, b2)
    h = jnp.maximum(lin(z, w3, b3), 0.0)
    return lin(h, w4, b4)


# --------------------------------------------------------------------------------- demo
if __name__ == "__main__":
    key = jax.random.PRNGKey(0)
    kx, kp, kx2 = jax.random.split(key, 3)

    # Small shapes consistent with the module: x (B, C, T), entry_size = C*T.
    B, C, T = 2, 4, 16
    entry_size = C * T              # 64
    latent_dims = entry_size // 4   # 16 (as in new_encoder_for_dataset)

    x = jax.random.normal(kx, (B, C, T), dtype=jnp.float32)
    params = make_autoencoder_params(kp, entry_size, latent_dims, dtype=jnp.float32)
    ref_f32 = _reference_forward(x, params)

    # --- f32 MXU path, unfolded (literal 4-matmul layout): matches f32 reference tightly.
    prep_f32_u = prepare_params(params, compute_dtype=jnp.float32, fold_middle=False)
    out_f32_u = jax.block_until_ready(autoencoder_forward(x, prep_f32_u))
    assert out_f32_u.shape == (B, entry_size), out_f32_u.shape
    assert jnp.allclose(out_f32_u, ref_f32, atol=1e-5, rtol=1e-5), "f32 unfolded mismatch"

    # --- f32 MXU path with the folded middle matmul (3 MXU passes).
    prep_f32_f = prepare_params(params, compute_dtype=jnp.float32, fold_middle=True)
    out_f32_f = jax.block_until_ready(autoencoder_forward(x, prep_f32_f))
    assert jnp.allclose(out_f32_f, ref_f32, atol=1e-4, rtol=1e-4), "f32 folded mismatch"

    # --- default perf config: bf16 MXU inputs (incl. bf16 input tiles), bf16 output.
    prep_bf16 = prepare_params(params)                              # bf16 + folded
    out_bf16 = jax.block_until_ready(
        autoencoder_forward(x, prep_bf16, out_dtype=jnp.bfloat16))
    assert out_bf16.dtype == jnp.bfloat16
    assert jnp.allclose(out_bf16.astype(jnp.float32), ref_f32, atol=8e-2, rtol=8e-2), \
        "bf16 too far from f32 reference"

    # --- larger batch: multi-step grid (pipelined ragged tiles, resident weights).
    Bb = 300
    xb = jax.random.normal(kx2, (Bb, C, T), dtype=jnp.float32)
    out_b = jax.block_until_ready(autoencoder_forward(xb, prep_f32_f, tb_max=512))
    ref_b = _reference_forward(xb, params)
    assert out_b.shape == (Bb, entry_size), out_b.shape
    assert jnp.allclose(out_b, ref_b, atol=1e-4, rtol=1e-4), "batched f32 mismatch"

    print("KERNEL_OK")
</pallas_src>

<mosaic_0001>
module attributes {stable_mosaic.version = 11 : i64} {
  func.func @_ae_kernel_unfolded(%arg0: i32, %arg1: memref<16x128xf32, #tpu.memory_space<vmem>>, %arg2: memref<128x128xf32, #tpu.memory_space<vmem>>, %arg3: memref<1x128xf32, #tpu.memory_space<vmem>>, %arg4: memref<128x128xf32, #tpu.memory_space<vmem>>, %arg5: memref<1x128xf32, #tpu.memory_space<vmem>>, %arg6: memref<128x128xf32, #tpu.memory_space<vmem>>, %arg7: memref<1x128xf32, #tpu.memory_space<vmem>>, %arg8: memref<128x128xf32, #tpu.memory_space<vmem>>, %arg9: memref<1x128xf32, #tpu.memory_space<vmem>>, %arg10: memref<16x128xf32, #tpu.memory_space<vmem>>) attributes {dimension_semantics = [#tpu.dimension_semantics<parallel>], iteration_bounds = array<i64: 1>, scalar_prefetch = 0 : i64, scratch_operands = 0 : i64, tpu.core_type = #tpu.core_type<tc>, window_params = [{transform_indices = @transform_0, window_bounds = array<i64: 16, 128>}, {pipeline_mode = #tpu.pipeline_mode<synchronous>, transform_indices = @transform_1, window_bounds = array<i64: 128, 128>}, {pipeline_mode = #tpu.pipeline_mode<synchronous>, transform_indices = @transform_2, window_bounds = array<i64: 1, 128>}, {pipeline_mode = #tpu.pipeline_mode<synchronous>, transform_indices = @transform_3, window_bounds = array<i64: 128, 128>}, {pipeline_mode = #tpu.pipeline_mode<synchronous>, transform_indices = @transform_4, window_bounds = array<i64: 1, 128>}, {pipeline_mode = #tpu.pipeline_mode<synchronous>, transform_indices = @transform_5, window_bounds = array<i64: 128, 128>}, {pipeline_mode = #tpu.pipeline_mode<synchronous>, transform_indices = @transform_6, window_bounds = array<i64: 1, 128>}, {pipeline_mode = #tpu.pipeline_mode<synchronous>, transform_indices = @transform_7, window_bounds = array<i64: 128, 128>}, {pipeline_mode = #tpu.pipeline_mode<synchronous>, transform_indices = @transform_8, window_bounds = array<i64: 1, 128>}, {transform_indices = @transform_9, window_bounds = array<i64: 16, 128>}]} {
    %c0 = arith.constant 0 : index
    %c0_0 = arith.constant 0 : index
    %0 = vector.load %arg1[%c0, %c0_0] : memref<16x128xf32, #tpu.memory_space<vmem>>, vector<16x128xf32>
    %c0_1 = arith.constant 0 : index
    %c0_2 = arith.constant 0 : index
    %1 = vector.load %arg2[%c0_1, %c0_2] : memref<128x128xf32, #tpu.memory_space<vmem>>, vector<128x128xf32>
    %cst = arith.constant dense<0.000000e+00> : vector<16x128xf32>
    %2 = tpu.matmul %0, %1, %cst {dimension_numbers = #tpu.dot_dimension_numbers<[1], [0], [0], [1], [0, 0, 1, 1], [], []>} : vector<16x128xf32>, vector<128x128xf32>, vector<16x128xf32> -> vector<16x128xf32>
    %c0_3 = arith.constant 0 : index
    %c0_4 = arith.constant 0 : index
    %3 = vector.load %arg3[%c0_3, %c0_4] : memref<1x128xf32, #tpu.memory_space<vmem>>, vector<1x128xf32>
    %4 = vector.broadcast %3 : vector<1x128xf32> to vector<16x128xf32>
    %5 = arith.addf %2, %4 : vector<16x128xf32>
    %cst_5 = arith.constant 0.000000e+00 : f32
    %6 = vector.broadcast %cst_5 : f32 to vector<16x128xf32>
    %7 = arith.maximumf %5, %6 : vector<16x128xf32>
    %c0_6 = arith.constant 0 : index
    %c0_7 = arith.constant 0 : index
    %8 = vector.load %arg4[%c0_6, %c0_7] : memref<128x128xf32, #tpu.memory_space<vmem>>, vector<128x128xf32>
    %cst_8 = arith.constant dense<0.000000e+00> : vector<16x128xf32>
    %9 = tpu.matmul %7, %8, %cst_8 {dimension_numbers = #tpu.dot_dimension_numbers<[1], [0], [0], [1], [0, 0, 1, 1], [], []>} : vector<16x128xf32>, vector<128x128xf32>, vector<16x128xf32> -> vector<16x128xf32>
    %c0_9 = arith.constant 0 : index
    %c0_10 = arith.constant 0 : index
    %10 = vector.load %arg5[%c0_9, %c0_10] : memref<1x128xf32, #tpu.memory_space<vmem>>, vector<1x128xf32>
    %11 = vector.broadcast %10 : vector<1x128xf32> to vector<16x128xf32>
    %12 = arith.addf %9, %11 : vector<16x128xf32>
    %c0_11 = arith.constant 0 : index
    %c0_12 = arith.constant 0 : index
    %13 = vector.load %arg6[%c0_11, %c0_12] : memref<128x128xf32, #tpu.memory_space<vmem>>, vector<128x128xf32>
    %cst_13 = arith.constant dense<0.000000e+00> : vector<16x128xf32>
    %14 = tpu.matmul %12, %13, %cst_13 {dimension_numbers = #tpu.dot_dimension_numbers<[1], [0], [0], [1], [0, 0, 1, 1], [], []>} : vector<16x128xf32>, vector<128x128xf32>, vector<16x128xf32> -> vector<16x128xf32>
    %c0_14 = arith.constant 0 : index
    %c0_15 = arith.constant 0 : index
    %15 = vector.load %arg7[%c0_14, %c0_15] : memref<1x128xf32, #tpu.memory_space<vmem>>, vector<1x128xf32>
    %16 = vector.broadcast %15 : vector<1x128xf32> to vector<16x128xf32>
    %17 = arith.addf %14, %16 : vector<16x128xf32>
    %cst_16 = arith.constant 0.000000e+00 : f32
    %18 = vector.broadcast %cst_16 : f32 to vector<16x128xf32>
    %19 = arith.maximumf %17, %18 : vector<16x128xf32>
    %c0_17 = arith.constant 0 : index
    %c0_18 = arith.constant 0 : index
    %20 = vector.load %arg8[%c0_17, %c0_18] : memref<128x128xf32, #tpu.memory_space<vmem>>, vector<128x128xf32>
    %cst_19 = arith.constant dense<0.000000e+00> : vector<16x128xf32>
    %21 = tpu.matmul %19, %20, %cst_19 {dimension_numbers = #tpu.dot_dimension_numbers<[1], [0], [0], [1], [0, 0, 1, 1], [], []>} : vector<16x128xf32>, vector<128x128xf32>, vector<16x128xf32> -> vector<16x128xf32>
    %c0_20 = arith.constant 0 : index
    %c0_21 = arith.constant 0 : index
    %22 = vector.load %arg9[%c0_20, %c0_21] : memref<1x128xf32, #tpu.memory_space<vmem>>, vector<1x128xf32>
    %23 = vector.broadcast %22 : vector<1x128xf32> to vector<16x128xf32>
    %24 = arith.addf %21, %23 : vector<16x128xf32>
    %c0_22 = arith.constant 0 : index
    %c0_23 = arith.constant 0 : index
    %25 = vector.load %arg10[%c0_22, %c0_23] : memref<16x128xf32, #tpu.memory_space<vmem>>, vector<16x128xf32>
    tpu.vector_store %arg10[%c0_22, %c0_23], %24 {strides = array<i32>} : memref<16x128xf32, #tpu.memory_space<vmem>>, vector<16x128xf32>,
    return
  }
  func.func @transform_0(%arg0: i32) -> (i32, i32) {
    %c0_i32 = arith.constant 0 : i32
    %c0_i32_0 = arith.constant 0 : i32
    return %arg0, %c0_i32 : i32, i32
  }
  func.func @transform_1(%arg0: i32) -> (i32, i32) {
    %c0_i32 = arith.constant 0 : i32
    %c0_i32_0 = arith.constant 0 : i32
    %c0_i32_1 = arith.constant 0 : i32
    return %c0_i32, %c0_i32_0 : i32, i32
  }
  func.func @transform_2(%arg0: i32) -> (i32, i32) {
    %c0_i32 = arith.constant 0 : i32
    %c0_i32_0 = arith.constant 0 : i32
    %c0_i32_1 = arith.constant 0 : i32
    return %c0_i32, %c0_i32_0 : i32, i32
  }
  func.func @transform_3(%arg0: i32) -> (i32, i32) {
    %c0_i32 = arith.constant 0 : i32
    %c0_i32_0 = arith.constant 0 : i32
    %c0_i32_1 = arith.constant 0 : i32
    return %c0_i32, %c0_i32_0 : i32, i32
  }
  func.func @transform_4(%arg0: i32) -> (i32, i32) {
    %c0_i32 = arith.constant 0 : i32
    %c0_i32_0 = arith.constant 0 : i32
    %c0_i32_1 = arith.constant 0 : i32
    return %c0_i32, %c0_i32_0 : i32, i32
  }
  func.func @transform_5(%arg0: i32) -> (i32, i32) {
    %c0_i32 = arith.constant 0 : i32
    %c0_i32_0 = arith.constant 0 : i32
    %c0_i32_1 = arith.constant 0 : i32
    return %c0_i32, %c0_i32_0 : i32, i32
  }
  func.func @transform_6(%arg0: i32) -> (i32, i32) {
    %c0_i32 = arith.constant 0 : i32
    %c0_i32_0 = arith.constant 0 : i32
    %c0_i32_1 = arith.constant 0 : i32
    return %c0_i32, %c0_i32_0 : i32, i32
  }
  func.func @transform_7(%arg0: i32) -> (i32, i32) {
    %c0_i32 = arith.constant 0 : i32
    %c0_i32_0 = arith.constant 0 : i32
    %c0_i32_1 = arith.constant 0 : i32
    return %c0_i32, %c0_i32_0 : i32, i32
  }
  func.func @transform_8(%arg0: i32) -> (i32, i32) {
    %c0_i32 = arith.constant 0 : i32
    %c0_i32_0 = arith.constant 0 : i32
    %c0_i32_1 = arith.constant 0 : i32
    return %c0_i32, %c0_i32_0 : i32, i32
  }
  func.func @transform_9(%arg0: i32) -> (i32, i32) {
    %c0_i32 = arith.constant 0 : i32
    %c0_i32_0 = arith.constant 0 : i32
    return %arg0, %c0_i32 : i32, i32
  }
}

module attributes {stable_mosaic.version = 11 : i64} {
  func.func @_ae_kernel_unfolded(%arg0: i32, %arg1: memref<16x128xf32, #tpu.memory_space<vmem>>, %arg2: memref<128x128xf32, #tpu.memory_space<vmem>>, %arg3: memref<1x128xf32, #tpu.memory_space<vmem>>, %arg4: memref<128x128xf32, #tpu.memory_space<vmem>>, %arg5: memref<1x128xf32, #tpu.memory_space<vmem>>, %arg6: memref<128x128xf32, #tpu.memory_space<vmem>>, %arg7: memref<1x128xf32, #tpu.memory_space<vmem>>, %arg8: memref<128x128xf32, #tpu.memory_space<vmem>>, %arg9: memref<1x128xf32, #tpu.memory_space<vmem>>, %arg10: memref<16x128xf32, #tpu.memory_space<vmem>>) attributes {dimension_semantics = [#tpu.dimension_semantics<parallel>], iteration_bounds = array<i64: 1>, scalar_prefetch = 0 : i64, scratch_operands = 0 : i64, tpu.core_type = #tpu.core_type<tc>, window_params = [{transform_indices = @transform_0, window_bounds = array<i64: 16, 128>}, {pipeline_mode = #tpu.pipeline_mode<synchronous>, transform_indices = @transform_1, window_bounds = array<i64: 128, 128>}, {pipeline_mode = #tpu.pipeline_mode<synchronous>, transform_indices = @transform_2, window_bounds = array<i64: 1, 128>}, {pipeline_mode = #tpu.pipeline_mode<synchronous>, transform_indices = @transform_3, window_bounds = array<i64: 128, 128>}, {pipeline_mode = #tpu.pipeline_mode<synchronous>, transform_indices = @transform_4, window_bounds = array<i64: 1, 128>}, {pipeline_mode = #tpu.pipeline_mode<synchronous>, transform_indices = @transform_5, window_bounds = array<i64: 128, 128>}, {pipeline_mode = #tpu.pipeline_mode<synchronous>, transform_indices = @transform_6, window_bounds = array<i64: 1, 128>}, {pipeline_mode = #tpu.pipeline_mode<synchronous>, transform_indices = @transform_7, window_bounds = array<i64: 128, 128>}, {pipeline_mode = #tpu.pipeline_mode<synchronous>, transform_indices = @transform_8, window_bounds = array<i64: 1, 128>}, {transform_indices = @transform_9, window_bounds = array<i64: 16, 128>}]} {
    %c0 = arith.constant 0 : index
    %c0_0 = arith.constant 0 : index
    %0 = vector.load %arg1[%c0, %c0_0] : memref<16x128xf32, #tpu.memory_space<vmem>>, vector<16x128xf32>
    %c0_1 = arith.constant 0 : index
    %c0_2 = arith.constant 0 : index
    %1 = vector.load %arg2[%c0_1, %c0_2] : memref<128x128xf32, #tpu.memory_space<vmem>>, vector<128x128xf32>
    %cst = arith.constant dense<0.000000e+00> : vector<16x128xf32>
    %2 = tpu.matmul %0, %1, %cst {dimension_numbers = #tpu.dot_dimension_numbers<[1], [0], [0], [1], [0, 0, 1, 1], [], []>} : vector<16x128xf32>, vector<128x128xf32>, vector<16x128xf32> -> vector<16x128xf32>
    %c0_3 = arith.constant 0 : index
    %c0_4 = arith.constant 0 : index
    %3 = vector.load %arg3[%c0_3, %c0_4] : memref<1x128xf32, #tpu.memory_space<vmem>>, vector<1x128xf32>
    %4 = vector.broadcast %3 : vector<1x128xf32> to vector<16x128xf32>
    %5 = arith.addf %2, %4 : vector<16x128xf32>
    %cst_5 = arith.constant 0.000000e+00 : f32
    %6 = vector.broadcast %cst_5 : f32 to vector<16x128xf32>
    %7 = arith.maximumf %5, %6 : vector<16x128xf32>
    %c0_6 = arith.constant 0 : index
    %c0_7 = arith.constant 0 : index
    %8 = vector.load %arg4[%c0_6, %c0_7] : memref<128x128xf32, #tpu.memory_space<vmem>>, vector<128x128xf32>
    %cst_8 = arith.constant dense<0.000000e+00> : vector<16x128xf32>
    %9 = tpu.matmul %7, %8, %cst_8 {dimension_numbers = #tpu.dot_dimension_numbers<[1], [0], [0], [1], [0, 0, 1, 1], [], []>} : vector<16x128xf32>, vector<128x128xf32>, vector<16x128xf32> -> vector<16x128xf32>
    %c0_9 = arith.constant 0 : index
    %c0_10 = arith.constant 0 : index
    %10 = vector.load %arg5[%c0_9, %c0_10] : memref<1x128xf32, #tpu.memory_space<vmem>>, vector<1x128xf32>
    %11 = vector.broadcast %10 : vector<1x128xf32> to vector<16x128xf32>
    %12 = arith.addf %9, %11 : vector<16x128xf32>
    %c0_11 = arith.constant 0 : index
    %c0_12 = arith.constant 0 : index
    %13 = vector.load %arg6[%c0_11, %c0_12] : memref<128x128xf32, #tpu.memory_space<vmem>>, vector<128x128xf32>
    %cst_13 = arith.constant dense<0.000000e+00> : vector<16x128xf32>
    %14 = tpu.matmul %12, %13, %cst_13 {dimension_numbers = #tpu.dot_dimension_numbers<[1], [0], [0], [1], [0, 0, 1, 1], [], []>} : vector<16x128xf32>, vector<128x128xf32>, vector<16x128xf32> -> vector<16x128xf32>
    %c0_14 = arith.constant 0 : index
    %c0_15 = arith.constant 0 : index
    %15 = vector.load %arg7[%c0_14, %c0_15] : memref<1x128xf32, #tpu.memory_space<vmem>>, vector<1x128xf32>
    %16 = vector.broadcast %15 : vector<1x128xf32> to vector<16x128xf32>
    %17 = arith.addf %14, %16 : vector<16x128xf32>
    %cst_16 = arith.constant 0.000000e+00 : f32
    %18 = vector.broadcast %cst_16 : f32 to vector<16x128xf32>
    %19 = arith.maximumf %17, %18 : vector<16x128xf32>
    %c0_17 = arith.constant 0 : index
    %c0_18 = arith.constant 0 : index
    %20 = vector.load %arg8[%c0_17, %c0_18] : memref<128x128xf32, #tpu.memory_space<vmem>>, vector<128x128xf32>
    %cst_19 = arith.constant dense<0.000000e+00> : vector<16x128xf32>
    %21 = tpu.matmul %19, %20, %cst_19 {dimension_numbers = #tpu.dot_dimension_numbers<[1], [0], [0], [1], [0, 0, 1, 1], [], []>} : vector<16x128xf32>, vector<128x128xf32>, vector<16x128xf32> -> vector<16x128xf32>
    %c0_20 = arith.constant 0 : index
    %c0_21 = arith.constant 0 : index
    %22 = vector.load %arg9[%c0_20, %c0_21] : memref<1x128xf32, #tpu.memory_space<vmem>>, vector<1x128xf32>
    %23 = vector.broadcast %22 : vector<1x128xf32> to vector<16x128xf32>
    %24 = arith.addf %21, %23 : vector<16x128xf32>
    %c0_22 = arith.constant 0 : index
    %c0_23 = arith.constant 0 : index
    %25 = vector.load %arg10[%c0_22, %c0_23] : memref<16x128xf32, #tpu.memory_space<vmem>>, vector<16x128xf32>
    tpu.vector_store %arg10[%c0_22, %c0_23], %24 {strides = array<i32>} : memref<16x128xf32, #tpu.memory_space<vmem>>, vector<16x128xf32>,
    return
  }
  func.func @transform_0(%arg0: i32) -> (i32, i32) {
    %c0_i32 = arith.constant 0 : i32
    %c0_i32_0 = arith.constant 0 : i32
    return %arg0, %c0_i32 : i32, i32
  }
  func.func @transform_1(%arg0: i32) -> (i32, i32) {
    %c0_i32 = arith.constant 0 : i32
    %c0_i32_0 = arith.constant 0 : i32
    %c0_i32_1 = arith.constant 0 : i32
    return %c0_i32, %c0_i32_0 : i32, i32
  }
  func.func @transform_2(%arg0: i32) -> (i32, i32) {
    %c0_i32 = arith.constant 0 : i32
    %c0_i32_0 = arith.constant 0 : i32
    %c0_i32_1 = arith.constant 0 : i32
    return %c0_i32, %c0_i32_0 : i32, i32
  }
  func.func @transform_3(%arg0: i32) -> (i32, i32) {
    %c0_i32 = arith.constant 0 : i32
    %c0_i32_0 = arith.constant 0 : i32
    %c0_i32_1 = arith.constant 0 : i32
    return %c0_i32, %c0_i32_0 : i32, i32
  }
  func.func @transform_4(%arg0: i32) -> (i32, i32) {
    %c0_i32 = arith.constant 0 : i32
    %c0_i32_0 = arith.constant 0 : i32
    %c0_i32_1 = arith.constant 0 : i32
    return %c0_i32, %c0_i32_0 : i32, i32
  }
  func.func @transform_5(%arg0: i32) -> (i32, i32) {
    %c0_i32 = arith.constant 0 : i32
    %c0_i32_0 = arith.constant 0 : i32
    %c0_i32_1 = arith.constant 0 : i32
    return %c0_i32, %c0_i32_0 : i32, i32
  }
  func.func @transform_6(%arg0: i32) -> (i32, i32) {
    %c0_i32 = arith.constant 0 : i32
    %c0_i32_0 = arith.constant 0 : i32
    %c0_i32_1 = arith.constant 0 : i32
    return %c0_i32, %c0_i32_0 : i32, i32
  }
  func.func @transform_7(%arg0: i32) -> (i32, i32) {
    %c0_i32 = arith.constant 0 : i32
    %c0_i32_0 = arith.constant 0 : i32
    %c0_i32_1 = arith.constant 0 : i32
    return %c0_i32, %c0_i32_0 : i32, i32
  }
  func.func @transform_8(%arg0: i32) -> (i32, i32) {
    %c0_i32 = arith.constant 0 : i32
    %c0_i32_0 = arith.constant 0 : i32
    %c0_i32_1 = arith.constant 0 : i32
    return %c0_i32, %c0_i32_0 : i32, i32
  }
  func.func @transform_9(%arg0: i32) -> (i32, i32) {
    %c0_i32 = arith.constant 0 : i32
    %c0_i32_0 = arith.constant 0 : i32
    return %arg0, %c0_i32 : i32, i32
  }
}

</mosaic_0001>

<bundles_post_ra>
// kernel: tpu_custom_call.1
= control target key start
LH: loop header
LB: loop body
LE: loop exit
PB: predicated region body
PF: predicated region fallthrough
CT: control target
= control target key end

     0   :  { %14 = vsyncpa [#allocation3], 0  ;;  %s1176_s0 = inlined_call_operand.hbm [shape: f32[2,128], index: 0, kind: input, shape index: {}]   ;;  %s1177_s1 = inlined_call_operand.hbm [shape: f32[128,128], index: 1, kind: input, shape index: {}]   ;;  %s1178_s2 = inlined_call_operand.vmem [shape: f32[1,128], index: 2, kind: input, shape index: {}]   ;;  %s1179_s3 = inlined_call_operand.hbm [shape: f32[128,128], index: 3, kind: input, shape index: {}]   ;;  %s1180_s4 = inlined_call_operand.vmem [shape: f32[1,128], index: 4, kind: input, shape index: {}]   ;;  %s1181_s5 = inlined_call_operand.hbm [shape: f32[128,128], index: 5, kind: input, shape index: {}]   ;;  %s1182_s6 = inlined_call_operand.vmem [shape: f32[1,128], index: 6, kind: input, shape index: {}]   ;;  %s1183_s7 = inlined_call_operand.hbm [shape: f32[128,128], index: 7, kind: input, shape index: {}]   ;;  %s1184_s8 = inlined_call_operand.vmem [shape: f32[1,128], index: 8, kind: input, shape index: {}]   ;;  %s1185_s9 = inlined_call_operand.hbm [shape: f32[2,128], index: 9, kind: output, shape index: {}]  }
   0x1   :  { %15 = vsyncpa [#allocation6], 0 }
   0x2   :  { %16 = vsyncpa [#allocation9], 0 }
   0x3   :  { %17 = vsyncpa [#allocation4], 0 }
   0x4   :  { %22 = vsyncadd [#allocation3], 224  ;;  %s1014_s30 = smov [#allocation5]   ;;  %s874_s13 = scalar_lea.hbm %s1177_s1, 2048 }
   0x5   :  { %s35_s10 = sshll.u32 %s1014_s30, 4  ;;  %p875_p0 = scmp.ne.s32.totalorder %s1177_s1, %s874_s13  ;;  %s36_s10 = int_to_ptr.vmem [resolvable:$true] %s35_s10 }
   0x6   :  { %p878_p1 = scmp.lt.u32.totalorder %s874_s13, %s1177_s1 }
   0x8   :  { %p880_p2 = pnand %p878_p1, %p875_p0 }
   0xa   :  { %883 = shalt.err (!%p880_p2)
}
   0xb   :  { %s884_s18 = scalar_lea.vmem %s36_s10, 2048  ;;  %p889_p4 = scmp.lt.s32.totalorder %s36_s10, %s36_s10 }
   0xc   :  { %p885_p3 = scmp.ne.s32.totalorder %s36_s10, %s884_s18  ;;  %p890_p5 = scmp.lt.s32.totalorder %s884_s18, %s884_s18 }
   0xe   :  { %p891_p6 = por %p890_p5, %p889_p4 }
  0x10   :  { %p892_p7 = pnand %p891_p6, %p885_p3 }
  0x12   :  { %895 = shalt.err (!%p892_p7)
}
  0x13   :  { %s1015_s19 = smov 128   ;;  %s1016_s20 = smov 8  }
  0x14   :  { %41 = dma.hbm_to_vmem [thread:$0]  %s1177_s1, 2048, %s36_s10, [#allocation6], %s1015_s19, %s1015_s19, %s1016_s20  }
  0x15   :  { %s1017_s23 = smov [#allocation8]   ;;  %s1018_s25 = smov [#allocation2]  }
  0x16   :  { %s63_s24 = sshll.u32 %s1017_s23, 4  ;;  %s23_s26 = sshll.u32 %s1018_s25, 4  ;;  %s64_s24 = int_to_ptr.vmem [resolvable:$true] %s63_s24  ;;  %s24_s26 = int_to_ptr.vmem [resolvable:$true] %s23_s26 }
  0x17   :  { %s896_s29 = scalar_lea.hbm %s1181_s5, 2048 }
  0x18   :  { %p897_p8 = scmp.ne.s32.totalorder %s1181_s5, %s896_s29  ;;  %p900_p9 = scmp.lt.u32.totalorder %s896_s29, %s1181_s5 }
  0x1a   :  { %p902_p10 = pnand %p900_p9, %p897_p8 }
  0x1c   :  { %905 = shalt.err (!%p902_p10)
}
  0x1d   :  { %s906_s1 = scalar_lea.vmem %s64_s24, 2048  ;;  %p911_p12 = scmp.lt.s32.totalorder %s64_s24, %s64_s24 }
  0x1e   :  { %p907_p11 = scmp.ne.s32.totalorder %s64_s24, %s906_s1  ;;  %p912_p13 = scmp.lt.s32.totalorder %s906_s1, %s906_s1 }
  0x20   :  { %p913_p0 = por %p912_p13, %p911_p12 }
  0x22   :  { %p914_p1 = pnand %p913_p0, %p907_p11 }
  0x24   :  { %917 = shalt.err (!%p914_p1)
}
  0x25   :  { %69 = dma.hbm_to_vmem [thread:$0]  %s1181_s5, 2048, %s64_s24, [#allocation9], %s1015_s19, %s1015_s19, %s1016_s20  }
  0x26   :  { %s918_s17 = scalar_lea.hbm %s1176_s0, 32 }
  0x27   :  { %p919_p2 = scmp.ne.s32.totalorder %s1176_s0, %s918_s17  ;;  %p922_p3 = scmp.lt.u32.totalorder %s918_s17, %s1176_s0 }
  0x29   :  { %p924_p4 = pnand %p922_p3, %p919_p2 }
  0x2b   :  { %927 = shalt.err (!%p924_p4)
}
  0x2c   :  { %s928_s25 = scalar_lea.vmem %s24_s26, 32  ;;  %s932_s27 = scalar_lea.vmem %s24_s26, 256 }
  0x2d   :  { %p929_p5 = scmp.ne.s32.totalorder %s24_s26, %s928_s25  ;;  %p933_p6 = scmp.lt.s32.totalorder %s24_s26, %s24_s26 }
  0x2e   :  { %p934_p7 = scmp.lt.s32.totalorder %s932_s27, %s928_s25 }
  0x30   :  { %p935_p8 = por %p934_p7, %p933_p6 }
  0x32   :  { %p936_p9 = pnand %p935_p8, %p929_p5 }
  0x34   :  { %939 = shalt.err (!%p936_p9)
}
  0x35   :  { %s1019_s5 = smov 32   ;;  %s1020_s24 = smov 2  }
  0x36   :  { %29 = dma.hbm_to_vmem [thread:$0]  %s1176_s0, 32, %s24_s26, [#allocation3], %s1019_s5, %s1019_s5, %s1020_s24  }
  0x37   :  { %s1021_s30 = smov [#allocation7]   ;;  %s1022_s12 = smov [#allocation10]  }
  0x38   :  { %s49_s11 = sshll.u32 %s1021_s30, 4  ;;  %s77_s13 = sshll.u32 %s1022_s12, 4  ;;  %s50_s11 = int_to_ptr.vmem [resolvable:$true] %s49_s11  ;;  %s78_s13 = int_to_ptr.vmem [resolvable:$true] %s77_s13 }
  0x39   :  { %s940_s14 = scalar_lea.hbm %s1179_s3, 2048 }
  0x3a   :  { %p941_p10 = scmp.ne.s32.totalorder %s1179_s3, %s940_s14  ;;  %p944_p11 = scmp.lt.u32.totalorder %s940_s14, %s1179_s3 }
  0x3c   :  { %p946_p12 = pnand %p944_p11, %p941_p10 }
  0x3e   :  { %949 = shalt.err (!%p946_p12)
}
  0x3f   :  { %s950_s0 = scalar_lea.vmem %s50_s11, 2048  ;;  %p955_p0 = scmp.lt.s32.totalorder %s50_s11, %s50_s11 }
  0x40   :  { %p951_p13 = scmp.ne.s32.totalorder %s50_s11, %s950_s0  ;;  %p956_p1 = scmp.lt.s32.totalorder %s950_s0, %s950_s0 }
  0x42   :  { %p957_p2 = por %p956_p1, %p955_p0 }
  0x44   :  { %p958_p3 = pnand %p957_p2, %p951_p13 }
  0x46   :  { %961 = shalt.err (!%p958_p3)
}
  0x47   :  { %55 = dma.hbm_to_vmem [thread:$0]  %s1179_s3, 2048, %s50_s11, [#allocation6], %s1015_s19, %s1015_s19, %s1016_s20  }
  0x48   :  { %s962_s25 = scalar_lea.hbm %s1183_s7, 2048 }
  0x49   :  { %p963_p4 = scmp.ne.s32.totalorder %s1183_s7, %s962_s25  ;;  %p966_p5 = scmp.lt.u32.totalorder %s962_s25, %s1183_s7 }
  0x4b   :  { %p968_p6 = pnand %p966_p5, %p963_p4 }
  0x4d   :  { %971 = shalt.err (!%p968_p6)
}
  0x4e   :  { %s972_s12 = scalar_lea.vmem %s78_s13, 2048  ;;  %p977_p8 = scmp.lt.s32.totalorder %s78_s13, %s78_s13 }
  0x4f   :  { %p973_p7 = scmp.ne.s32.totalorder %s78_s13, %s972_s12  ;;  %p978_p9 = scmp.lt.s32.totalorder %s972_s12, %s972_s12 }
  0x51   :  { %p979_p10 = por %p978_p9, %p977_p8 }
  0x53   :  { %p980_p11 = pnand %p979_p10, %p973_p7 }
  0x55   :  { %983 = shalt.err (!%p980_p11)
}
  0x56   :  { %83 = dma.hbm_to_vmem [thread:$0]  %s1183_s7, 2048, %s78_s13, [#allocation9], %s1015_s19, %s1015_s19, %s1016_s20  }
  0x57   :  { %1006 = dma.done.wait [#allocation3], 256  }
  0x58   :  { %1007 = vsyncadd [#allocation3], 4294967040 }
  0x59   :  { %1008 = dma.done.wait [#allocation6], 4096  }
  0x5a   :  { %1009 = vsyncadd [#allocation6], 4294963200 }
  0x5b   :  { %1010 = dma.done.wait [#allocation9], 4096  }
  0x5c   :  { %1011 = vsyncadd [#allocation9], 4294963200  ;;  %v103_v0 = vld [vmem:[#allocation5] sm:$0xff]  ;;  %v104_v1 = vld [vmem:[#allocation5 + $0x8] sm:$0xff] }
  0x5d   :  { %v105_v2 = vld [vmem:[#allocation5 + $0x10] sm:$0xff]  ;;  %v736_v3 = vpack.c.bf16 %v104_v1, %v103_v0  ;;  %v106_v4 = vld [vmem:[#allocation5 + $0x18] sm:$0xff]  ;;  %v107_v6 = vld [vmem:[#allocation5 + $0x20] sm:$0xff] }
  0x5e   :  { %v740_v5 = vpack.c.bf16 %v106_v4, %v105_v2  ;;  %v108_v7 = vld [vmem:[#allocation5 + $0x28] sm:$0xff]  ;;  %v109_v9 = vld [vmem:[#allocation5 + $0x30] sm:$0xff]  ;;  %v110_v10 = vld [vmem:[#allocation5 + $0x38] sm:$0xff] }
  0x5f   :  { %737 = vmatprep.subr.bf16.mxu0 %v736_v3  ;;  %v744_v8 = vpack.c.bf16 %v108_v7, %v107_v6  ;;  %v101_v11 = vld [vmem:[#allocation2] sm:$0xff]  ;;  %v203_v12 = vld [vmem:[#allocation7] sm:$0xff]  ;;  %v204_v13 = vld [vmem:[#allocation7 + $0x8] sm:$0xff]  ;;  %v748_v20 = vpack.c.bf16 %v110_v10, %v109_v9 }
  0x60   :  { %739 = vmatpush3.bf16.msra.mxu0 %v736_v3  ;;  %628 = vmatprep.mubr.f32.mxu0 %v101_v11  ;;  %v205_v14 = vld [vmem:[#allocation7 + $0x10] sm:$0xff]  ;;  %v768_v15 = vpack.c.bf16 %v204_v13, %v203_v12  ;;  %v206_v16 = vld [vmem:[#allocation7 + $0x18] sm:$0xff]  ;;  %v207_v18 = vld [vmem:[#allocation7 + $0x20] sm:$0xff] }
  0x61   :  { %741 = vmatprep.subr.bf16.mxu0 %v740_v5  ;;  %v772_v17 = vpack.c.bf16 %v206_v16, %v205_v14  ;;  %v208_v19 = vld [vmem:[#allocation7 + $0x28] sm:$0xff]  ;;  %v111_v21 = vld [vmem:[#allocation5 + $0x40] sm:$0xff]  ;;  %v209_v24 = vld [vmem:[#allocation7 + $0x30] sm:$0xff] }
  0x62   :  { %769 = vmatprep.subr.bf16.mxu1 %v768_v15  ;;  %v112_v22 = vld [vmem:[#allocation5 + $0x48] sm:$0xff]  ;;  %v776_v23 = vpack.c.bf16 %v208_v19, %v207_v18  ;;  %v210_v25 = vld [vmem:[#allocation7 + $0x38] sm:$0xff]  ;;  %v113_v27 = vld [vmem:[#allocation5 + $0x50] sm:$0xff] }
  0x63   :  { %771 = vmatpush3.bf16.msra.mxu1 %v768_v15  ;;  %v752_v26 = vpack.c.bf16 %v112_v22, %v111_v21  ;;  %v114_v28 = vld [vmem:[#allocation5 + $0x58] sm:$0xff]  ;;  %v780_v29 = vpack.c.bf16 %v210_v25, %v209_v24  ;;  %v211_v30 = vld [vmem:[#allocation7 + $0x40] sm:$0xff]  ;;  %v212_v31 = vld [vmem:[#allocation7 + $0x48] sm:$0xff] }
  0x64   :  { %743 = vmatpush3.bf16.msra.mxu0 %v740_v5  ;;  %773 = vmatprep.subr.bf16.mxu1 %v772_v17  ;;  %v756_v32 = vpack.c.bf16 %v114_v28, %v113_v27  ;;  %v115_v33 = vld [vmem:[#allocation5 + $0x60] sm:$0xff]  ;;  %v116_v34 = vld [vmem:[#allocation5 + $0x68] sm:$0xff]  ;;  %v784_v35 = vpack.c.bf16 %v212_v31, %v211_v30  ;;  %v213_v36 = vld [vmem:[#allocation7 + $0x50] sm:$0xff] }
  0x65   :  { %745 = vmatprep.subr.bf16.mxu0 %v744_v8  ;;  %v214_v37 = vld [vmem:[#allocation7 + $0x58] sm:$0xff]  ;;  %v760_v38 = vpack.c.bf16 %v116_v34, %v115_v33  ;;  %v117_v39 = vld [vmem:[#allocation5 + $0x70] sm:$0xff]  ;;  %v215_v42 = vld [vmem:[#allocation7 + $0x60] sm:$0xff] }
  0x66   :  { %v118_v40 = vld [vmem:[#allocation5 + $0x78] sm:$0xff]  ;;  %v788_v41 = vpack.c.bf16 %v214_v37, %v213_v36  ;;  %v216_v43 = vld [vmem:[#allocation7 + $0x68] sm:$0xff]  ;;  %v217_v47 = vld [vmem:[#allocation7 + $0x70] sm:$0xff] }
  0x67   :  { %775 = vmatpush3.bf16.msra.mxu1 %v772_v17  ;;  %v764_v44 = vpack.c.bf16 %v118_v40, %v117_v39  ;;  %v792_v45 = vpack.c.bf16 %v216_v43, %v215_v42  ;;  %v102_v46 = vld [vmem:[#allocation2 + $0x8] sm:$0xff]  ;;  %v301_v50 = vld [vmem:[#allocation8] sm:$0xff]  ;;  %v302_v51 = vld [vmem:[#allocation8 + $0x8] sm:$0xff] }
  0x68   :  { %747 = vmatpush3.bf16.msra.mxu0 %v744_v8  ;;  %777 = vmatprep.subr.bf16.mxu1 %v776_v23  ;;  %v218_v48 = vld [vmem:[#allocation7 + $0x78] sm:$0xff]  ;;  %v303_v52 = vld [vmem:[#allocation8 + $0x10] sm:$0xff]  ;;  %v800_v53 = vpack.c.bf16 %v302_v51, %v301_v50  ;;  %v305_v56 = vld [vmem:[#allocation8 + $0x20] sm:$0xff] }
  0x69   :  { %749 = vmatprep.subr.bf16.mxu0 %v748_v20  ;;  %v796_v49 = vpack.c.bf16 %v218_v48, %v217_v47  ;;  %v304_v54 = vld [vmem:[#allocation8 + $0x18] sm:$0xff]  ;;  %v306_v57 = vld [vmem:[#allocation8 + $0x28] sm:$0xff]  ;;  %v307_v59 = vld [vmem:[#allocation8 + $0x30] sm:$0xff] }
  0x6a   :  { %v804_v55 = vpack.c.bf16 %v304_v54, %v303_v52  ;;  %v808_v58 = vpack.c.bf16 %v306_v57, %v305_v56  ;;  %v308_v60 = vld [vmem:[#allocation8 + $0x38] sm:$0xff]  ;;  %v309_v62 = vld [vmem:[#allocation8 + $0x40] sm:$0xff]  ;;  %v310_v63 = vld [vmem:[#allocation8 + $0x48] sm:$0xff] }
  0x6b   :  { %779 = vmatpush3.bf16.msra.mxu1 %v776_v23  ;;  %v812_v61 = vpack.c.bf16 %v308_v60, %v307_v59  ;;  %v816_v0 = vpack.c.bf16 %v310_v63, %v309_v62  ;;  %v311_v1 = vld [vmem:[#allocation8 + $0x50] sm:$0xff]  ;;  %v312_v2 = vld [vmem:[#allocation8 + $0x58] sm:$0xff]  ;;  %v313_v4 = vld [vmem:[#allocation8 + $0x60] sm:$0xff] }
  0x6c   :  { %751 = vmatpush3.bf16.msra.mxu0 %v748_v20  ;;  %781 = vmatprep.subr.bf16.mxu1 %v780_v29  ;;  %v820_v3 = vpack.c.bf16 %v312_v2, %v311_v1  ;;  %v314_v5 = vld [vmem:[#allocation8 + $0x68] sm:$0xff]  ;;  %v520_v7 = vld [vmem:[%s1178_s2] ss:$0 sm:$0xff]  ;;  %v316_v15 = vld [vmem:[#allocation8 + $0x78] sm:$0xff] }
  0x6d   :  { %753 = vmatprep.subr.bf16.mxu0 %v752_v26  ;;  %v824_v6 = vpack.c.bf16 %v314_v5, %v313_v4  ;;  %v315_v14 = vld [vmem:[#allocation8 + $0x70] sm:$0xff]  ;;  %v401_v17 = vld [vmem:[#allocation10] sm:$0xff]  ;;  %v402_v18 = vld [vmem:[#allocation10 + $0x8] sm:$0xff] }
  0x6e   :  { %v828_v16 = vpack.c.bf16 %v316_v15, %v315_v14  ;;  %v403_v19 = vld [vmem:[#allocation10 + $0x10] sm:$0xff]  ;;  %v832_v20 = vpack.c.bf16 %v402_v18, %v401_v17  ;;  %v404_v21 = vld [vmem:[#allocation10 + $0x18] sm:$0xff]  ;;  %v405_v23 = vld [vmem:[#allocation10 + $0x20] sm:$0xff] }
  0x6f   :  { %783 = vmatpush3.bf16.msra.mxu1 %v780_v29  ;;  %v836_v22 = vpack.c.bf16 %v404_v21, %v403_v19  ;;  %v406_v24 = vld [vmem:[#allocation10 + $0x28] sm:$0xff]  ;;  %v408_v27 = vld [vmem:[#allocation10 + $0x38] sm:$0xff]  ;;  %v409_v29 = vld [vmem:[#allocation10 + $0x40] sm:$0xff] }
  0x70   :  { %755 = vmatpush3.bf16.msra.mxu0 %v752_v26  ;;  %785 = vmatprep.subr.bf16.mxu1 %v784_v35  ;;  %v840_v25 = vpack.c.bf16 %v406_v24, %v405_v23  ;;  %v407_v26 = vld [vmem:[#allocation10 + $0x30] sm:$0xff]  ;;  %v410_v30 = vld [vmem:[#allocation10 + $0x48] sm:$0xff]  ;;  %v412_v33 = vld [vmem:[#allocation10 + $0x58] sm:$0xff] }
  0x71   :  { %757 = vmatprep.subr.bf16.mxu0 %v756_v32  ;;  %v844_v28 = vpack.c.bf16 %v408_v27, %v407_v26  ;;  %v848_v31 = vpack.c.bf16 %v410_v30, %v409_v29  ;;  %v414_v36 = vld [vmem:[#allocation10 + $0x68] sm:$0xff]  ;;  %v415_v43 = vld [vmem:[#allocation10 + $0x70] sm:$0xff] }
  0x73   :  { %787 = vmatpush3.bf16.msra.mxu1 %v784_v35  ;;  %v413_v35 = vld [vmem:[#allocation10 + $0x60] sm:$0xff] }
  0x74   :  { %759 = vmatpush3.bf16.msra.mxu0 %v756_v32  ;;  %789 = vmatprep.subr.bf16.mxu1 %v788_v41  ;;  %v411_v32 = vld [vmem:[#allocation10 + $0x50] sm:$0xff]  ;;  %v856_v37 = vpack.c.bf16 %v414_v36, %v413_v35 }
  0x75   :  { %761 = vmatprep.subr.bf16.mxu0 %v760_v38  ;;  %v852_v34 = vpack.c.bf16 %v412_v33, %v411_v32 }
  0x77   :  { %791 = vmatpush3.bf16.msra.mxu1 %v788_v41 }
  0x78   :  { %763 = vmatpush3.bf16.msra.mxu0 %v760_v38  ;;  %793 = vmatprep.subr.bf16.mxu1 %v792_v45  ;;  %v521_v38 = vld [vmem:[%s1180_s4] ss:$0 sm:$0xff] }
  0x79   :  { %765 = vmatprep.subr.bf16.mxu0 %v764_v44 }
  0x7b   :  { %795 = vmatpush3.bf16.msra.mxu1 %v792_v45 }
  0x7c   :  { %767 = vmatpush3.bf16.msra.mxu0 %v764_v44  ;;  %797 = vmatprep.subr.bf16.mxu1 %v796_v49  ;;  %v416_v44 = vld [vmem:[#allocation10 + $0x78] sm:$0xff] }
  0x7d   :  { %801 = vmatprep.subr.bf16.mxu0 %v800_v53  ;;  %v860_v45 = vpack.c.bf16 %v416_v44, %v415_v43 }
  0x7f   :  { %629 = vmatmul.mubr.f32.vlgmr.msra.gmra.mrb[0].mxu0 %v102_v46  ;;  %799 = vmatpush3.bf16.msra.mxu1 %v796_v49  ;;  %v522_v46 = vld [vmem:[%s1182_s6] ss:$0 sm:$0xff] }
  0x80   :  { %803 = vmatpush3.bf16.msra.mxu0 %v800_v53  ;;  %833 = vmatprep.subr.bf16.mxu1 %v832_v20  ;;  %v523_v53 = vld [vmem:[%s1184_s8] ss:$0 sm:$0xff] }
  0x81   :  { %805 = vmatprep.subr.bf16.mxu0 %v804_v55 }
  0x84   :  { %807 = vmatpush3.bf16.msra.mxu0 %v804_v55 }
  0x85   :  { %809 = vmatprep.subr.bf16.mxu0 %v808_v58 }
  0x88   :  { %811 = vmatpush3.bf16.msra.mxu0 %v808_v58 }
  0x89   :  { %813 = vmatprep.subr.bf16.mxu0 %v812_v61 }
  0x8c   :  { %815 = vmatpush3.bf16.msra.mxu0 %v812_v61 }
  0x8d   :  { %817 = vmatprep.subr.bf16.mxu0 %v816_v0 }
  0x90   :  { %819 = vmatpush3.bf16.msra.mxu0 %v816_v0 }
  0x91   :  { %821 = vmatprep.subr.bf16.mxu0 %v820_v3 }
  0x94   :  { %823 = vmatpush3.bf16.msra.mxu0 %v820_v3 }
  0x95   :  { %825 = vmatprep.subr.bf16.mxu0 %v824_v6 }
  0x98   :  { %827 = vmatpush3.bf16.msra.mxu0 %v824_v6 }
  0x99   :  { %829 = vmatprep.subr.bf16.mxu0 %v828_v16 }
  0x9c   :  { %831 = vmatpush3.bf16.msra.mxu0 %v828_v16 }
 0x152   :  { %v630_v8 = vpop.f32.mrb[0].mxu0 }
 0x153   :  { %v198_v9 = vadd.f32 %v630_v8, %v520_v7  ;;  %v192_v10 = vpop.f32.mrb[1].mxu0 }
 0x154   :  { %v193_v11 = vadd.f32 %v520_v7, %v192_v10 }
 0x155   :  { %v202_v13 = vmax.f32 %v198_v9, 0.0 }
 0x156   :  { %v201_v12 = vmax.f32 %v193_v11, 0.0 }
 0x158   :  { %663 = vmatprep.mubr.f32.mxu1 %v201_v12 }
 0x159   :  { %664 = vmatmul.mubr.f32.vlgmr.msra.gmra.mrb[0].mxu1 %v202_v13 }
 0x15a   :  { %835 = vmatpush3.bf16.msra.mxu1 %v832_v20 }
 0x15b   :  { %837 = vmatprep.subr.bf16.mxu1 %v836_v22 }
 0x15e   :  { %839 = vmatpush3.bf16.msra.mxu1 %v836_v22 }
 0x15f   :  { %841 = vmatprep.subr.bf16.mxu1 %v840_v25 }
 0x162   :  { %843 = vmatpush3.bf16.msra.mxu1 %v840_v25 }
 0x163   :  { %845 = vmatprep.subr.bf16.mxu1 %v844_v28 }
 0x166   :  { %847 = vmatpush3.bf16.msra.mxu1 %v844_v28 }
 0x167   :  { %849 = vmatprep.subr.bf16.mxu1 %v848_v31 }
 0x16a   :  { %851 = vmatpush3.bf16.msra.mxu1 %v848_v31 }
 0x16b   :  { %853 = vmatprep.subr.bf16.mxu1 %v852_v34 }
 0x16e   :  { %855 = vmatpush3.bf16.msra.mxu1 %v852_v34 }
 0x16f   :  { %857 = vmatprep.subr.bf16.mxu1 %v856_v37 }
 0x172   :  { %859 = vmatpush3.bf16.msra.mxu1 %v856_v37 }
 0x173   :  { %861 = vmatprep.subr.bf16.mxu1 %v860_v45 }
 0x176   :  { %863 = vmatpush3.bf16.msra.mxu1 %v860_v45 }
 0x22c   :  { %v665_v39 = vpop.f32.mrb[0].mxu1 }
 0x22d   :  { %v292_v40 = vpop.f32.mrb[1].mxu1  ;;  %v298_v42 = vadd.f32 %v665_v39, %v521_v38 }
 0x22e   :  { %v293_v41 = vadd.f32 %v521_v38, %v292_v40 }
 0x230   :  { %698 = vmatprep.mubr.f32.mxu0 %v293_v41 }
 0x231   :  { %699 = vmatmul.mubr.f32.vlgmr.msra.gmra.mrb[2].mxu0 %v298_v42 }
 0x304   :  { %v700_v47 = vpop.f32.mrb[2].mxu0 }
 0x305   :  { %v396_v48 = vadd.f32 %v700_v47, %v522_v46  ;;  %v390_v49 = vpop.f32.mrb[3].mxu0 }
 0x306   :  { %v391_v50 = vadd.f32 %v522_v46, %v390_v49 }
 0x307   :  { %v400_v52 = vmax.f32 %v396_v48, 0.0 }
 0x308   :  { %v399_v51 = vmax.f32 %v391_v50, 0.0 }
 0x30a   :  { %733 = vmatprep.mubr.f32.mxu1 %v399_v51 }
 0x30b   :  { %734 = vmatmul.mubr.f32.vlgmr.msra.gmra.mrb[2].mxu1 %v400_v52 }
 0x3de   :  { %v735_v54 = vpop.f32.mrb[2].mxu1 }
 0x3df   :  { %v496_v55 = vadd.f32 %v735_v54, %v523_v53  ;;  %v490_v56 = vpop.f32.mrb[3].mxu1 }
 0x3e0   :  { %v491_v57 = vadd.f32 %v523_v53, %v490_v56 }
 0x3e1   :  { %500 = vst [vmem:[#allocation11 + $0x8] sm:$0xff] %v496_v55 }
 0x3e2   :  { %499 = vst [vmem:[#allocation11] sm:$0xff] %v491_v57 }
 0x3e3   :  { %505 = vsyncadd [#allocation4], 224  ;;  %s1023_s6 = smov [#allocation11]  }
 0x3e4   :  { %s506_s14 = sshll.u32 %s1023_s6, 4  ;;  %s507_s14 = int_to_ptr.vmem [resolvable:$true] %s506_s14 }
 0x3e5   :  { %s984_s15 = scalar_lea.vmem %s507_s14, 32  ;;  %s988_s16 = scalar_lea.vmem %s507_s14, 256 }
 0x3e6   :  { %p985_p12 = scmp.ne.s32.totalorder %s507_s14, %s984_s15  ;;  %p989_p13 = scmp.lt.s32.totalorder %s507_s14, %s507_s14 }
 0x3e7   :  { %p990_p0 = scmp.lt.s32.totalorder %s988_s16, %s984_s15 }
 0x3e9   :  { %p991_p1 = por %p990_p0, %p989_p13 }
 0x3eb   :  { %p992_p2 = pnand %p991_p1, %p985_p12 }
 0x3ed   :  { %995 = shalt.err (!%p992_p2)
}
 0x3ee   :  { %s996_s18 = scalar_lea.hbm %s1185_s9, 32 }
 0x3ef   :  { %p997_p3 = scmp.ne.s32.totalorder %s1185_s9, %s996_s18  ;;  %p1000_p4 = scmp.lt.u32.totalorder %s996_s18, %s1185_s9 }
 0x3f1   :  { %p1002_p5 = pnand %p1000_p4, %p997_p3 }
 0x3f3   :  { %1005 = shalt.err (!%p1002_p5)
}
 0x3f4   :  { %512 = dma.vmem_to_hbm [thread:$0]  %s507_s14, 32, %s1185_s9, [#allocation4], %s1019_s5, %s1019_s5, %s1020_s24  }
 0x3f5   :  { %1012 = dma.done.wait [#allocation4], 256  }
 0x3f6   :  { %1013 = vsyncadd [#allocation4], 4294967040 }
 0x3f7   :  { %516 = vsyncpa [#allocation3], 1 }
 0x3f8   :  { %517 = vsyncpa [#allocation6], 1 }
 0x3f9   :  { %518 = vsyncpa [#allocation9], 1 }
 0x3fa   :  { %519 = vsyncpa [#allocation4], 1 }

// kernel: tpu_custom_call.1
= control target key start
LH: loop header
LB: loop body
LE: loop exit
PB: predicated region body
PF: predicated region fallthrough
CT: control target
= control target key end

     0   :  { %14 = vsyncpa [#allocation3], 0  ;;  %s1176_s0 = inlined_call_operand.hbm [shape: f32[2,128], index: 0, kind: input, shape index: {}]   ;;  %s1177_s1 = inlined_call_operand.hbm [shape: f32[128,128], index: 1, kind: input, shape index: {}]   ;;  %s1178_s2 = inlined_call_operand.vmem [shape: f32[1,128], index: 2, kind: input, shape index: {}]   ;;  %s1179_s3 = inlined_call_operand.hbm [shape: f32[128,128], index: 3, kind: input, shape index: {}]   ;;  %s1180_s4 = inlined_call_operand.vmem [shape: f32[1,128], index: 4, kind: input, shape index: {}]   ;;  %s1181_s5 = inlined_call_operand.hbm [shape: f32[128,128], index: 5, kind: input, shape index: {}]   ;;  %s1182_s6 = inlined_call_operand.vmem [shape: f32[1,128], index: 6, kind: input, shape index: {}]   ;;  %s1183_s7 = inlined_call_operand.hbm [shape: f32[128,128], index: 7, kind: input, shape index: {}]   ;;  %s1184_s8 = inlined_call_operand.vmem [shape: f32[1,128], index: 8, kind: input, shape index: {}]   ;;  %s1185_s9 = inlined_call_operand.hbm [shape: f32[2,128], index: 9, kind: output, shape index: {}]  }
   0x1   :  { %15 = vsyncpa [#allocation6], 0 }
   0x2   :  { %16 = vsyncpa [#allocation9], 0 }
   0x3   :  { %17 = vsyncpa [#allocation4], 0 }
   0x4   :  { %22 = vsyncadd [#allocation3], 224  ;;  %s1014_s30 = smov [#allocation5]   ;;  %s874_s13 = scalar_lea.hbm %s1177_s1, 2048 }
   0x5   :  { %s35_s10 = sshll.u32 %s1014_s30, 4  ;;  %p875_p0 = scmp.ne.s32.totalorder %s1177_s1, %s874_s13  ;;  %s36_s10 = int_to_ptr.vmem [resolvable:$true] %s35_s10 }
   0x6   :  { %p878_p1 = scmp.lt.u32.totalorder %s874_s13, %s1177_s1 }
   0x8   :  { %p880_p2 = pnand %p878_p1, %p875_p0 }
   0xa   :  { %883 = shalt.err (!%p880_p2)
}
   0xb   :  { %s884_s18 = scalar_lea.vmem %s36_s10, 2048  ;;  %p889_p4 = scmp.lt.s32.totalorder %s36_s10, %s36_s10 }
   0xc   :  { %p885_p3 = scmp.ne.s32.totalorder %s36_s10, %s884_s18  ;;  %p890_p5 = scmp.lt.s32.totalorder %s884_s18, %s884_s18 }
   0xe   :  { %p891_p6 = por %p890_p5, %p889_p4 }
  0x10   :  { %p892_p7 = pnand %p891_p6, %p885_p3 }
  0x12   :  { %895 = shalt.err (!%p892_p7)
}
  0x13   :  { %s1015_s19 = smov 128   ;;  %s1016_s20 = smov 8  }
  0x14   :  { %41 = dma.hbm_to_vmem [thread:$0]  %s1177_s1, 2048, %s36_s10, [#allocation6], %s1015_s19, %s1015_s19, %s1016_s20  }
  0x15   :  { %s1017_s23 = smov [#allocation8]   ;;  %s1018_s25 = smov [#allocation2]  }
  0x16   :  { %s63_s24 = sshll.u32 %s1017_s23, 4  ;;  %s23_s26 = sshll.u32 %s1018_s25, 4  ;;  %s64_s24 = int_to_ptr.vmem [resolvable:$true] %s63_s24  ;;  %s24_s26 = int_to_ptr.vmem [resolvable:$true] %s23_s26 }
  0x17   :  { %s896_s29 = scalar_lea.hbm %s1181_s5, 2048 }
  0x18   :  { %p897_p8 = scmp.ne.s32.totalorder %s1181_s5, %s896_s29  ;;  %p900_p9 = scmp.lt.u32.totalorder %s896_s29, %s1181_s5 }
  0x1a   :  { %p902_p10 = pnand %p900_p9, %p897_p8 }
  0x1c   :  { %905 = shalt.err (!%p902_p10)
}
  0x1d   :  { %s906_s1 = scalar_lea.vmem %s64_s24, 2048  ;;  %p911_p12 = scmp.lt.s32.totalorder %s64_s24, %s64_s24 }
  0x1e   :  { %p907_p11 = scmp.ne.s32.totalorder %s64_s24, %s906_s1  ;;  %p912_p13 = scmp.lt.s32.totalorder %s906_s1, %s906_s1 }
  0x20   :  { %p913_p0 = por %p912_p13, %p911_p12 }
  0x22   :  { %p914_p1 = pnand %p913_p0, %p907_p11 }
  0x24   :  { %917 = shalt.err (!%p914_p1)
}
  0x25   :  { %69 = dma.hbm_to_vmem [thread:$0]  %s1181_s5, 2048, %s64_s24, [#allocation9], %s1015_s19, %s1015_s19, %s1016_s20  }
  0x26   :  { %s918_s17 = scalar_lea.hbm %s1176_s0, 32 }
  0x27   :  { %p919_p2 = scmp.ne.s32.totalorder %s1176_s0, %s918_s17  ;;  %p922_p3 = scmp.lt.u32.totalorder %s918_s17, %s1176_s0 }
  0x29   :  { %p924_p4 = pnand %p922_p3, %p919_p2 }
  0x2b   :  { %927 = shalt.err (!%p924_p4)
}
  0x2c   :  { %s928_s25 = scalar_lea.vmem %s24_s26, 32  ;;  %s932_s27 = scalar_lea.vmem %s24_s26, 256 }
  0x2d   :  { %p929_p5 = scmp.ne.s32.totalorder %s24_s26, %s928_s25  ;;  %p933_p6 = scmp.lt.s32.totalorder %s24_s26, %s24_s26 }
  0x2e   :  { %p934_p7 = scmp.lt.s32.totalorder %s932_s27, %s928_s25 }
  0x30   :  { %p935_p8 = por %p934_p7, %p933_p6 }
  0x32   :  { %p936_p9 = pnand %p935_p8, %p929_p5 }
  0x34   :  { %939 = shalt.err (!%p936_p9)
}
  0x35   :  { %s1019_s5 = smov 32   ;;  %s1020_s24 = smov 2  }
  0x36   :  { %29 = dma.hbm_to_vmem [thread:$0]  %s1176_s0, 32, %s24_s26, [#allocation3], %s1019_s5, %s1019_s5, %s1020_s24  }
  0x37   :  { %s1021_s30 = smov [#allocation7]   ;;  %s1022_s12 = smov [#allocation10]  }
  0x38   :  { %s49_s11 = sshll.u32 %s1021_s30, 4  ;;  %s77_s13 = sshll.u32 %s1022_s12, 4  ;;  %s50_s11 = int_to_ptr.vmem [resolvable:$true] %s49_s11  ;;  %s78_s13 = int_to_ptr.vmem [resolvable:$true] %s77_s13 }
  0x39   :  { %s940_s14 = scalar_lea.hbm %s1179_s3, 2048 }
  0x3a   :  { %p941_p10 = scmp.ne.s32.totalorder %s1179_s3, %s940_s14  ;;  %p944_p11 = scmp.lt.u32.totalorder %s940_s14, %s1179_s3 }
  0x3c   :  { %p946_p12 = pnand %p944_p11, %p941_p10 }
  0x3e   :  { %949 = shalt.err (!%p946_p12)
}
  0x3f   :  { %s950_s0 = scalar_lea.vmem %s50_s11, 2048  ;;  %p955_p0 = scmp.lt.s32.totalorder %s50_s11, %s50_s11 }
  0x40   :  { %p951_p13 = scmp.ne.s32.totalorder %s50_s11, %s950_s0  ;;  %p956_p1 = scmp.lt.s32.totalorder %s950_s0, %s950_s0 }
  0x42   :  { %p957_p2 = por %p956_p1, %p955_p0 }
  0x44   :  { %p958_p3 = pnand %p957_p2, %p951_p13 }
  0x46   :  { %961 = shalt.err (!%p958_p3)
}
  0x47   :  { %55 = dma.hbm_to_vmem [thread:$0]  %s1179_s3, 2048, %s50_s11, [#allocation6], %s1015_s19, %s1015_s19, %s1016_s20  }
  0x48   :  { %s962_s25 = scalar_lea.hbm %s1183_s7, 2048 }
  0x49   :  { %p963_p4 = scmp.ne.s32.totalorder %s1183_s7, %s962_s25  ;;  %p966_p5 = scmp.lt.u32.totalorder %s962_s25, %s1183_s7 }
  0x4b   :  { %p968_p6 = pnand %p966_p5, %p963_p4 }
  0x4d   :  { %971 = shalt.err (!%p968_p6)
}
  0x4e   :  { %s972_s12 = scalar_lea.vmem %s78_s13, 2048  ;;  %p977_p8 = scmp.lt.s32.totalorder %s78_s13, %s78_s13 }
  0x4f   :  { %p973_p7 = scmp.ne.s32.totalorder %s78_s13, %s972_s12  ;;  %p978_p9 = scmp.lt.s32.totalorder %s972_s12, %s972_s12 }
  0x51   :  { %p979_p10 = por %p978_p9, %p977_p8 }
  0x53   :  { %p980_p11 = pnand %p979_p10, %p973_p7 }
  0x55   :  { %983 = shalt.err (!%p980_p11)
}
  0x56   :  { %83 = dma.hbm_to_vmem [thread:$0]  %s1183_s7, 2048, %s78_s13, [#allocation9], %s1015_s19, %s1015_s19, %s1016_s20  }
  0x57   :  { %1006 = dma.done.wait [#allocation3], 256  }
  0x58   :  { %1007 = vsyncadd [#allocation3], 4294967040 }
  0x59   :  { %1008 = dma.done.wait [#allocation6], 4096  }
  0x5a   :  { %1009 = vsyncadd [#allocation6], 4294963200 }
  0x5b   :  { %1010 = dma.done.wait [#allocation9], 4096  }
  0x5c   :  { %1011 = vsyncadd [#allocation9], 4294963200  ;;  %v103_v0 = vld [vmem:[#allocation5] sm:$0xff]  ;;  %v104_v1 = vld [vmem:[#allocation5 + $0x8] sm:$0xff] }
  0x5d   :  { %v105_v2 = vld [vmem:[#allocation5 + $0x10] sm:$0xff]  ;;  %v736_v3 = vpack.c.bf16 %v104_v1, %v103_v0  ;;  %v106_v4 = vld [vmem:[#allocation5 + $0x18] sm:$0xff]  ;;  %v107_v6 = vld [vmem:[#allocation5 + $0x20] sm:$0xff] }
  0x5e   :  { %v740_v5 = vpack.c.bf16 %v106_v4, %v105_v2  ;;  %v108_v7 = vld [vmem:[#allocation5 + $0x28] sm:$0xff]  ;;  %v109_v9 = vld [vmem:[#allocation5 + $0x30] sm:$0xff]  ;;  %v110_v10 = vld [vmem:[#allocation5 + $0x38] sm:$0xff] }
  0x5f   :  { %737 = vmatprep.subr.bf16.mxu0 %v736_v3  ;;  %v744_v8 = vpack.c.bf16 %v108_v7, %v107_v6  ;;  %v101_v11 = vld [vmem:[#allocation2] sm:$0xff]  ;;  %v203_v12 = vld [vmem:[#allocation7] sm:$0xff]  ;;  %v204_v13 = vld [vmem:[#allocation7 + $0x8] sm:$0xff]  ;;  %v748_v20 = vpack.c.bf16 %v110_v10, %v109_v9 }
  0x60   :  { %739 = vmatpush3.bf16.msra.mxu0 %v736_v3  ;;  %628 = vmatprep.mubr.f32.mxu0 %v101_v11  ;;  %v205_v14 = vld [vmem:[#allocation7 + $0x10] sm:$0xff]  ;;  %v768_v15 = vpack.c.bf16 %v204_v13, %v203_v12  ;;  %v206_v16 = vld [vmem:[#allocation7 + $0x18] sm:$0xff]  ;;  %v207_v18 = vld [vmem:[#allocation7 + $0x20] sm:$0xff] }
  0x61   :  { %741 = vmatprep.subr.bf16.mxu0 %v740_v5  ;;  %v772_v17 = vpack.c.bf16 %v206_v16, %v205_v14  ;;  %v208_v19 = vld [vmem:[#allocation7 + $0x28] sm:$0xff]  ;;  %v111_v21 = vld [vmem:[#allocation5 + $0x40] sm:$0xff]  ;;  %v209_v24 = vld [vmem:[#allocation7 + $0x30] sm:$0xff] }
  0x62   :  { %769 = vmatprep.subr.bf16.mxu1 %v768_v15  ;;  %v112_v22 = vld [vmem:[#allocation5 + $0x48] sm:$0xff]  ;;  %v776_v23 = vpack.c.bf16 %v208_v19, %v207_v18  ;;  %v210_v25 = vld [vmem:[#allocation7 + $0x38] sm:$0xff]  ;;  %v113_v27 = vld [vmem:[#allocation5 + $0x50] sm:$0xff] }
  0x63   :  { %771 = vmatpush3.bf16.msra.mxu1 %v768_v15  ;;  %v752_v26 = vpack.c.bf16 %v112_v22, %v111_v21  ;;  %v114_v28 = vld [vmem:[#allocation5 + $0x58] sm:$0xff]  ;;  %v780_v29 = vpack.c.bf16 %v210_v25, %v209_v24  ;;  %v211_v30 = vld [vmem:[#allocation7 + $0x40] sm:$0xff]  ;;  %v212_v31 = vld [vmem:[#allocation7 + $0x48] sm:$0xff] }
  0x64   :  { %743 = vmatpush3.bf16.msra.mxu0 %v740_v5  ;;  %773 = vmatprep.subr.bf16.mxu1 %v772_v17  ;;  %v756_v32 = vpack.c.bf16 %v114_v28, %v113_v27  ;;  %v115_v33 = vld [vmem:[#allocation5 + $0x60] sm:$0xff]  ;;  %v116_v34 = vld [vmem:[#allocation5 + $0x68] sm:$0xff]  ;;  %v784_v35 = vpack.c.bf16 %v212_v31, %v211_v30  ;;  %v213_v36 = vld [vmem:[#allocation7 + $0x50] sm:$0xff] }
  0x65   :  { %745 = vmatprep.subr.bf16.mxu0 %v744_v8  ;;  %v214_v37 = vld [vmem:[#allocation7 + $0x58] sm:$0xff]  ;;  %v760_v38 = vpack.c.bf16 %v116_v34, %v115_v33  ;;  %v117_v39 = vld [vmem:[#allocation5 + $0x70] sm:$0xff]  ;;  %v215_v42 = vld [vmem:[#allocation7 + $0x60] sm:$0xff] }
  0x66   :  { %v118_v40 = vld [vmem:[#allocation5 + $0x78] sm:$0xff]  ;;  %v788_v41 = vpack.c.bf16 %v214_v37, %v213_v36  ;;  %v216_v43 = vld [vmem:[#allocation7 + $0x68] sm:$0xff]  ;;  %v217_v47 = vld [vmem:[#allocation7 + $0x70] sm:$0xff] }
  0x67   :  { %775 = vmatpush3.bf16.msra.mxu1 %v772_v17  ;;  %v764_v44 = vpack.c.bf16 %v118_v40, %v117_v39  ;;  %v792_v45 = vpack.c.bf16 %v216_v43, %v215_v42  ;;  %v102_v46 = vld [vmem:[#allocation2 + $0x8] sm:$0xff]  ;;  %v301_v50 = vld [vmem:[#allocation8] sm:$0xff]  ;;  %v302_v51 = vld [vmem:[#allocation8 + $0x8] sm:$0xff] }
  0x68   :  { %747 = vmatpush3.bf16.msra.mxu0 %v744_v8  ;;  %777 = vmatprep.subr.bf16.mxu1 %v776_v23  ;;  %v218_v48 = vld [vmem:[#allocation7 + $0x78] sm:$0xff]  ;;  %v303_v52 = vld [vmem:[#allocation8 + $0x10] sm:$0xff]  ;;  %v800_v53 = vpack.c.bf16 %v302_v51, %v301_v50  ;;  %v305_v56 = vld [vmem:[#allocation8 + $0x20] sm:$0xff] }
  0x69   :  { %749 = vmatprep.subr.bf16.mxu0 %v748_v20  ;;  %v796_v49 = vpack.c.bf16 %v218_v48, %v217_v47  ;;  %v304_v54 = vld [vmem:[#allocation8 + $0x18] sm:$0xff]  ;;  %v306_v57 = vld [vmem:[#allocation8 + $0x28] sm:$0xff]  ;;  %v307_v59 = vld [vmem:[#allocation8 + $0x30] sm:$0xff] }
  0x6a   :  { %v804_v55 = vpack.c.bf16 %v304_v54, %v303_v52  ;;  %v808_v58 = vpack.c.bf16 %v306_v57, %v305_v56  ;;  %v308_v60 = vld [vmem:[#allocation8 + $0x38] sm:$0xff]  ;;  %v309_v62 = vld [vmem:[#allocation8 + $0x40] sm:$0xff]  ;;  %v310_v63 = vld [vmem:[#allocation8 + $0x48] sm:$0xff] }
  0x6b   :  { %779 = vmatpush3.bf16.msra.mxu1 %v776_v23  ;;  %v812_v61 = vpack.c.bf16 %v308_v60, %v307_v59  ;;  %v816_v0 = vpack.c.bf16 %v310_v63, %v309_v62  ;;  %v311_v1 = vld [vmem:[#allocation8 + $0x50] sm:$0xff]  ;;  %v312_v2 = vld [vmem:[#allocation8 + $0x58] sm:$0xff]  ;;  %v313_v4 = vld [vmem:[#allocation8 + $0x60] sm:$0xff] }
  0x6c   :  { %751 = vmatpush3.bf16.msra.mxu0 %v748_v20  ;;  %781 = vmatprep.subr.bf16.mxu1 %v780_v29  ;;  %v820_v3 = vpack.c.bf16 %v312_v2, %v311_v1  ;;  %v314_v5 = vld [vmem:[#allocation8 + $0x68] sm:$0xff]  ;;  %v520_v7 = vld [vmem:[%s1178_s2] ss:$0 sm:$0xff]  ;;  %v316_v15 = vld [vmem:[#allocation8 + $0x78] sm:$0xff] }
  0x6d   :  { %753 = vmatprep.subr.bf16.mxu0 %v752_v26  ;;  %v824_v6 = vpack.c.bf16 %v314_v5, %v313_v4  ;;  %v315_v14 = vld [vmem:[#allocation8 + $0x70] sm:$0xff]  ;;  %v401_v17 = vld [vmem:[#allocation10] sm:$0xff]  ;;  %v402_v18 = vld [vmem:[#allocation10 + $0x8] sm:$0xff] }
  0x6e   :  { %v828_v16 = vpack.c.bf16 %v316_v15, %v315_v14  ;;  %v403_v19 = vld [vmem:[#allocation10 + $0x10] sm:$0xff]  ;;  %v832_v20 = vpack.c.bf16 %v402_v18, %v401_v17  ;;  %v404_v21 = vld [vmem:[#allocation10 + $0x18] sm:$0xff]  ;;  %v405_v23 = vld [vmem:[#allocation10 + $0x20] sm:$0xff] }
  0x6f   :  { %783 = vmatpush3.bf16.msra.mxu1 %v780_v29  ;;  %v836_v22 = vpack.c.bf16 %v404_v21, %v403_v19  ;;  %v406_v24 = vld [vmem:[#allocation10 + $0x28] sm:$0xff]  ;;  %v408_v27 = vld [vmem:[#allocation10 + $0x38] sm:$0xff]  ;;  %v409_v29 = vld [vmem:[#allocation10 + $0x40] sm:$0xff] }
  0x70   :  { %755 = vmatpush3.bf16.msra.mxu0 %v752_v26  ;;  %785 = vmatprep.subr.bf16.mxu1 %v784_v35  ;;  %v840_v25 = vpack.c.bf16 %v406_v24, %v405_v23  ;;  %v407_v26 = vld [vmem:[#allocation10 + $0x30] sm:$0xff]  ;;  %v410_v30 = vld [vmem:[#allocation10 + $0x48] sm:$0xff]  ;;  %v412_v33 = vld [vmem:[#allocation10 + $0x58] sm:$0xff] }
  0x71   :  { %757 = vmatprep.subr.bf16.mxu0 %v756_v32  ;;  %v844_v28 = vpack.c.bf16 %v408_v27, %v407_v26  ;;  %v848_v31 = vpack.c.bf16 %v410_v30, %v409_v29  ;;  %v414_v36 = vld [vmem:[#allocation10 + $0x68] sm:$0xff]  ;;  %v415_v43 = vld [vmem:[#allocation10 + $0x70] sm:$0xff] }
  0x73   :  { %787 = vmatpush3.bf16.msra.mxu1 %v784_v35  ;;  %v413_v35 = vld [vmem:[#allocation10 + $0x60] sm:$0xff] }
  0x74   :  { %759 = vmatpush3.bf16.msra.mxu0 %v756_v32  ;;  %789 = vmatprep.subr.bf16.mxu1 %v788_v41  ;;  %v411_v32 = vld [vmem:[#allocation10 + $0x50] sm:$0xff]  ;;  %v856_v37 = vpack.c.bf16 %v414_v36, %v413_v35 }
  0x75   :  { %761 = vmatprep.subr.bf16.mxu0 %v760_v38  ;;  %v852_v34 = vpack.c.bf16 %v412_v33, %v411_v32 }
  0x77   :  { %791 = vmatpush3.bf16.msra.mxu1 %v788_v41 }
  0x78   :  { %763 = vmatpush3.bf16.msra.mxu0 %v760_v38  ;;  %793 = vmatprep.subr.bf16.mxu1 %v792_v45  ;;  %v521_v38 = vld [vmem:[%s1180_s4] ss:$0 sm:$0xff] }
  0x79   :  { %765 = vmatprep.subr.bf16.mxu0 %v764_v44 }
  0x7b   :  { %795 = vmatpush3.bf16.msra.mxu1 %v792_v45 }
  0x7c   :  { %767 = vmatpush3.bf16.msra.mxu0 %v764_v44  ;;  %797 = vmatprep.subr.bf16.mxu1 %v796_v49  ;;  %v416_v44 = vld [vmem:[#allocation10 + $0x78] sm:$0xff] }
  0x7d   :  { %801 = vmatprep.subr.bf16.mxu0 %v800_v53  ;;  %v860_v45 = vpack.c.bf16 %v416_v44, %v415_v43 }
  0x7f   :  { %629 = vmatmul.mubr.f32.vlgmr.msra.gmra.mrb[0].mxu0 %v102_v46  ;;  %799 = vmatpush3.bf16.msra.mxu1 %v796_v49  ;;  %v522_v46 = vld [vmem:[%s1182_s6] ss:$0 sm:$0xff] }
  0x80   :  { %803 = vmatpush3.bf16.msra.mxu0 %v800_v53  ;;  %833 = vmatprep.subr.bf16.mxu1 %v832_v20  ;;  %v523_v53 = vld [vmem:[%s1184_s8] ss:$0 sm:$0xff] }
  0x81   :  { %805 = vmatprep.subr.bf16.mxu0 %v804_v55 }
  0x84   :  { %807 = vmatpush3.bf16.msra.mxu0 %v804_v55 }
  0x85   :  { %809 = vmatprep.subr.bf16.mxu0 %v808_v58 }
  0x88   :  { %811 = vmatpush3.bf16.msra.mxu0 %v808_v58 }
  0x89   :  { %813 = vmatprep.subr.bf16.mxu0 %v812_v61 }
  0x8c   :  { %815 = vmatpush3.bf16.msra.mxu0 %v812_v61 }
  0x8d   :  { %817 = vmatprep.subr.bf16.mxu0 %v816_v0 }
  0x90   :  { %819 = vmatpush3.bf16.msra.mxu0 %v816_v0 }
  0x91   :  { %821 = vmatprep.subr.bf16.mxu0 %v820_v3 }
  0x94   :  { %823 = vmatpush3.bf16.msra.mxu0 %v820_v3 }
  0x95   :  { %825 = vmatprep.subr.bf16.mxu0 %v824_v6 }
  0x98   :  { %827 = vmatpush3.bf16.msra.mxu0 %v824_v6 }
  0x99   :  { %829 = vmatprep.subr.bf16.mxu0 %v828_v16 }
  0x9c   :  { %831 = vmatpush3.bf16.msra.mxu0 %v828_v16 }
 0x152   :  { %v630_v8 = vpop.f32.mrb[0].mxu0 }
 0x153   :  { %v198_v9 = vadd.f32 %v630_v8, %v520_v7  ;;  %v192_v10 = vpop.f32.mrb[1].mxu0 }
 0x154   :  { %v193_v11 = vadd.f32 %v520_v7, %v192_v10 }
 0x155   :  { %v202_v13 = vmax.f32 %v198_v9, 0.0 }
 0x156   :  { %v201_v12 = vmax.f32 %v193_v11, 0.0 }
 0x158   :  { %663 = vmatprep.mubr.f32.mxu1 %v201_v12 }
 0x159   :  { %664 = vmatmul.mubr.f32.vlgmr.msra.gmra.mrb[0].mxu1 %v202_v13 }
 0x15a   :  { %835 = vmatpush3.bf16.msra.mxu1 %v832_v20 }
 0x15b   :  { %837 = vmatprep.subr.bf16.mxu1 %v836_v22 }
 0x15e   :  { %839 = vmatpush3.bf16.msra.mxu1 %v836_v22 }
 0x15f   :  { %841 = vmatprep.subr.bf16.mxu1 %v840_v25 }
 0x162   :  { %843 = vmatpush3.bf16.msra.mxu1 %v840_v25 }
 0x163   :  { %845 = vmatprep.subr.bf16.mxu1 %v844_v28 }
 0x166   :  { %847 = vmatpush3.bf16.msra.mxu1 %v844_v28 }
 0x167   :  { %849 = vmatprep.subr.bf16.mxu1 %v848_v31 }
 0x16a   :  { %851 = vmatpush3.bf16.msra.mxu1 %v848_v31 }
 0x16b   :  { %853 = vmatprep.subr.bf16.mxu1 %v852_v34 }
 0x16e   :  { %855 = vmatpush3.bf16.msra.mxu1 %v852_v34 }
 0x16f   :  { %857 = vmatprep.subr.bf16.mxu1 %v856_v37 }
 0x172   :  { %859 = vmatpush3.bf16.msra.mxu1 %v856_v37 }
 0x173   :  { %861 = vmatprep.subr.bf16.mxu1 %v860_v45 }
 0x176   :  { %863 = vmatpush3.bf16.msra.mxu1 %v860_v45 }
 0x22c   :  { %v665_v39 = vpop.f32.mrb[0].mxu1 }
 0x22d   :  { %v292_v40 = vpop.f32.mrb[1].mxu1  ;;  %v298_v42 = vadd.f32 %v665_v39, %v521_v38 }
 0x22e   :  { %v293_v41 = vadd.f32 %v521_v38, %v292_v40 }
 0x230   :  { %698 = vmatprep.mubr.f32.mxu0 %v293_v41 }
 0x231   :  { %699 = vmatmul.mubr.f32.vlgmr.msra.gmra.mrb[2].mxu0 %v298_v42 }
 0x304   :  { %v700_v47 = vpop.f32.mrb[2].mxu0 }
 0x305   :  { %v396_v48 = vadd.f32 %v700_v47, %v522_v46  ;;  %v390_v49 = vpop.f32.mrb[3].mxu0 }
 0x306   :  { %v391_v50 = vadd.f32 %v522_v46, %v390_v49 }
 0x307   :  { %v400_v52 = vmax.f32 %v396_v48, 0.0 }
 0x308   :  { %v399_v51 = vmax.f32 %v391_v50, 0.0 }
 0x30a   :  { %733 = vmatprep.mubr.f32.mxu1 %v399_v51 }
 0x30b   :  { %734 = vmatmul.mubr.f32.vlgmr.msra.gmra.mrb[2].mxu1 %v400_v52 }
 0x3de   :  { %v735_v54 = vpop.f32.mrb[2].mxu1 }
 0x3df   :  { %v496_v55 = vadd.f32 %v735_v54, %v523_v53  ;;  %v490_v56 = vpop.f32.mrb[3].mxu1 }
 0x3e0   :  { %v491_v57 = vadd.f32 %v523_v53, %v490_v56 }
 0x3e1   :  { %500 = vst [vmem:[#allocation11 + $0x8] sm:$0xff] %v496_v55 }
 0x3e2   :  { %499 = vst [vmem:[#allocation11] sm:$0xff] %v491_v57 }
 0x3e3   :  { %505 = vsyncadd [#allocation4], 224  ;;  %s1023_s6 = smov [#allocation11]  }
 0x3e4   :  { %s506_s14 = sshll.u32 %s1023_s6, 4  ;;  %s507_s14 = int_to_ptr.vmem [resolvable:$true] %s506_s14 }
 0x3e5   :  { %s984_s15 = scalar_lea.vmem %s507_s14, 32  ;;  %s988_s16 = scalar_lea.vmem %s507_s14, 256 }
 0x3e6   :  { %p985_p12 = scmp.ne.s32.totalorder %s507_s14, %s984_s15  ;;  %p989_p13 = scmp.lt.s32.totalorder %s507_s14, %s507_s14 }
 0x3e7   :  { %p990_p0 = scmp.lt.s32.totalorder %s988_s16, %s984_s15 }
 0x3e9   :  { %p991_p1 = por %p990_p0, %p989_p13 }
 0x3eb   :  { %p992_p2 = pnand %p991_p1, %p985_p12 }
 0x3ed   :  { %995 = shalt.err (!%p992_p2)
}
 0x3ee   :  { %s996_s18 = scalar_lea.hbm %s1185_s9, 32 }
 0x3ef   :  { %p997_p3 = scmp.ne.s32.totalorder %s1185_s9, %s996_s18  ;;  %p1000_p4 = scmp.lt.u32.totalorder %s996_s18, %s1185_s9 }
 0x3f1   :  { %p1002_p5 = pnand %p1000_p4, %p997_p3 }
 0x3f3   :  { %1005 = shalt.err (!%p1002_p5)
}
 0x3f4   :  { %512 = dma.vmem_to_hbm [thread:$0]  %s507_s14, 32, %s1185_s9, [#allocation4], %s1019_s5, %s1019_s5, %s1020_s24  }
 0x3f5   :  { %1012 = dma.done.wait [#allocation4], 256  }
 0x3f6   :  { %1013 = vsyncadd [#allocation4], 4294967040 }
 0x3f7   :  { %516 = vsyncpa [#allocation3], 1 }
 0x3f8   :  { %517 = vsyncpa [#allocation6], 1 }
 0x3f9   :  { %518 = vsyncpa [#allocation9], 1 }
 0x3fa   :  { %519 = vsyncpa [#allocation4], 1 }

</bundles_post_ra>
